<compile_context>
chip_gen: v7x
topology: tpu7x:2x2x1
jax: 0.10.0
libtpu: 0.0.40
codegen_flags: <defaults>
</compile_context>

<pallas_src>
import functools

import jax
import jax.numpy as jnp
from jax.experimental import pallas as pl
from jax.experimental.pallas import tpu as pltpu

DIM = 4                        # self.dim in three_bus_PN
NUM_IRK_STAGES = 8             # dynamic.num_IRK_stages
OUT_DIM = NUM_IRK_STAGES + 1   # per-network output width (9)
HIDDEN = 32                    # fnn hidden width (layer_size = [4, 32, 32, 9])
NUM_NETS = 5                   # Y0..Y3 + Z
FUSED_H = NUM_NETS * HIDDEN    # 160
FUSED_O = NUM_NETS * OUT_DIM   # 45

LANE = 128                     # lane width; batch tile must be a multiple
MAX_TB = 2048                  # batch-tile cap (keeps VMEM well under 16 MiB)


def _round_up(x, m):
    return ((x + m - 1) // m) * m


def _fused_mlp_kernel(xT_ref, w1t_ref, b1_ref, w2t_ref, b2_ref, w3t_ref, b3_ref, o_ref):
    """One batch tile: all 5 MLPs as 3 fused matmuls, feature-major, f32.

    xT_ref : [4, TB]      (batch on lanes)
    o_ref  : [45, TB]     (per-net outputs are contiguous 9-row blocks)
    """
    xT = xT_ref[...]                                                    # [4, TB]
    h = jnp.tanh(jnp.dot(w1t_ref[...], xT,
                         preferred_element_type=jnp.float32) + b1_ref[...])   # [160, TB]
    h = jnp.tanh(jnp.dot(w2t_ref[...], h,
                         preferred_element_type=jnp.float32) + b2_ref[...])   # [160, TB]
    o_ref[...] = (jnp.dot(w3t_ref[...], h,
                          preferred_element_type=jnp.float32) + b3_ref[...]
                  ).astype(o_ref.dtype)                                        # [45, TB]


def pack_params(params):
    """Fuse the 5 per-net parameter sets into feature-major (transposed) fused
    operands, done once outside the kernel.

    Layer 1: nets concatenated along the output-feature axis (input x shared).
    Layers 2/3: block-diagonal so each net only feeds its own next layer.
    Biases are column vectors so they lane-broadcast inside the kernel.
    """
    w1t = jnp.concatenate([params["w1"][i].T for i in range(NUM_NETS)], axis=0)      # [160, 4]
    b1t = jnp.concatenate([params["b1"][i].reshape(HIDDEN, 1)
                           for i in range(NUM_NETS)], axis=0)                        # [160, 1]
    w2t = jax.scipy.linalg.block_diag(*[params["w2"][i].T for i in range(NUM_NETS)]) # [160, 160]
    b2t = jnp.concatenate([params["b2"][i].reshape(HIDDEN, 1)
                           for i in range(NUM_NETS)], axis=0)                        # [160, 1]
    w3t = jax.scipy.linalg.block_diag(*[params["w3"][i].T for i in range(NUM_NETS)]) # [45, 160]
    b3t = jnp.concatenate([params["b3"][i].reshape(OUT_DIM, 1)
                           for i in range(NUM_NETS)], axis=0)                        # [45, 1]
    return {"w1t": w1t, "b1": b1t, "w2t": w2t, "b2": b2t, "w3t": w3t, "b3": b3t}


@functools.partial(jax.jit, static_argnames=("max_tile",))
def three_bus_pn_forward(x, packed, *, max_tile=MAX_TB):
    """x: [batch, DIM] float32. packed: output of pack_params.
    Returns (Y0, Y1, Y2, Y3, Z), each [batch, OUT_DIM] (matches the PyTorch module)."""
    batch = x.shape[0]

    # Batch tile on the lane axis: multiple of 128, capped for VMEM residency.
    tb = min(max_tile, _round_up(batch, LANE))
    padded_b = _round_up(batch, tb)
    num_tiles = padded_b // tb

    # Feature-major input: [4, padded_B], zero-padded batch columns.
    x_pad = jnp.pad(x, ((0, padded_b - batch), (0, 0)))
    xT = x_pad.T

    flops = 2 * padded_b * (DIM * FUSED_H + FUSED_H * FUSED_H + FUSED_H * FUSED_O)
    transcendentals = padded_b * 2 * FUSED_H
    weight_bytes = 4 * (FUSED_H * DIM + FUSED_H + FUSED_H * FUSED_H + FUSED_H
                        + FUSED_O * FUSED_H + FUSED_O)
    bytes_accessed = padded_b * 4 * (DIM + FUSED_O) + weight_bytes

    out = pl.pallas_call(
        _fused_mlp_kernel,
        out_shape=jax.ShapeDtypeStruct((FUSED_O, padded_b), jnp.float32),
        grid_spec=pltpu.PrefetchScalarGridSpec(
            num_scalar_prefetch=0,
            grid=(num_tiles,),
            in_specs=[
                # Streamed batch tile (double-buffered by the pipeline).
                pl.BlockSpec((DIM, tb), lambda i: (0, i)),
                # Weights/biases: constant index_map -> fetched once, resident.
                pl.BlockSpec((FUSED_H, DIM), lambda i: (0, 0)),
                pl.BlockSpec((FUSED_H, 1), lambda i: (0, 0)),
                pl.BlockSpec((FUSED_H, FUSED_H), lambda i: (0, 0)),
                pl.BlockSpec((FUSED_H, 1), lambda i: (0, 0)),
                pl.BlockSpec((FUSED_O, FUSED_H), lambda i: (0, 0)),
                pl.BlockSpec((FUSED_O, 1), lambda i: (0, 0)),
            ],
            out_specs=pl.BlockSpec((FUSED_O, tb), lambda i: (0, i)),
        ),
        compiler_params=pltpu.CompilerParams(
            dimension_semantics=("parallel",),     # shard batch tiles across TCs (v7x)
            vmem_limit_bytes=32 * 1024 * 1024,
        ),
        cost_estimate=pl.CostEstimate(
            flops=flops,
            transcendentals=transcendentals,
            bytes_accessed=bytes_accessed,
        ),
    )(xT, packed["w1t"], packed["b1"], packed["w2t"], packed["b2"],
      packed["w3t"], packed["b3"])

    # out: [45, padded_B]; per-net results are contiguous 9-row blocks.
    # Transpose back to the module's [batch, 9] convention (cheap XLA ops).
    return tuple(out[i * OUT_DIM:(i + 1) * OUT_DIM, :batch].T
                 for i in range(NUM_NETS))


def init_params(key):
    """Deterministic Glorot-uniform weights, zero biases, stacked over 5 nets."""
    def glorot(k, shape):
        fan_in, fan_out = shape[-2], shape[-1]
        lim = jnp.sqrt(6.0 / (fan_in + fan_out))
        return jax.random.uniform(k, shape, jnp.float32, -lim, lim)

    k1, k2, k3 = jax.random.split(key, 3)
    return {
        "w1": glorot(k1, (NUM_NETS, DIM, HIDDEN)),
        "b1": jnp.zeros((NUM_NETS, 1, HIDDEN), jnp.float32),
        "w2": glorot(k2, (NUM_NETS, HIDDEN, HIDDEN)),
        "b2": jnp.zeros((NUM_NETS, 1, HIDDEN), jnp.float32),
        "w3": glorot(k3, (NUM_NETS, HIDDEN, OUT_DIM)),
        "b3": jnp.zeros((NUM_NETS, 1, OUT_DIM), jnp.float32),
    }


def _reference_forward(x, params):
    """Pure-JAX reference: 5 independent 3-layer tanh MLPs (same math as the
    PyTorch module's stacked Y[0..3] + Z)."""
    outs = []
    for i in range(NUM_NETS):
        h = jnp.tanh(x @ params["w1"][i] + params["b1"][i])
        h = jnp.tanh(h @ params["w2"][i] + params["b2"][i])
        outs.append(h @ params["w3"][i] + params["b3"][i])
    return tuple(outs)


if __name__ == "__main__":
    key = jax.random.PRNGKey(0)
    pkey, xkey = jax.random.split(key)
    params = init_params(pkey)
    packed = pack_params(params)

    batch = 8
    x = jax.random.normal(xkey, (batch, DIM), jnp.float32)

    outs = three_bus_pn_forward(x, packed)
    outs = jax.block_until_ready(outs)

    refs = _reference_forward(x, params)
    for o, r in zip(outs, refs):
        assert o.shape == (batch, OUT_DIM)
        assert jnp.allclose(o, r, atol=1e-5, rtol=1e-5)

    # Also exercise a batch that needs multiple grid tiles (padding path).
    x2 = jax.random.normal(jax.random.PRNGKey(1), (300, DIM), jnp.float32)
    outs2 = jax.block_until_ready(three_bus_pn_forward(x2, packed, max_tile=128))
    refs2 = _reference_forward(x2, params)
    for o, r in zip(outs2, refs2):
        assert o.shape == (300, OUT_DIM)
        assert jnp.allclose(o, r, atol=1e-5, rtol=1e-5)

    print("KERNEL_OK")
</pallas_src>

<mosaic_0001>
module attributes {stable_mosaic.version = 11 : i64} {
  func.func @_fused_mlp_kernel(%arg0: i32, %arg1: memref<4x128xf32, #tpu.memory_space<vmem>>, %arg2: memref<160x4xf32, #tpu.memory_space<vmem>>, %arg3: memref<160x1xf32, #tpu.memory_space<vmem>>, %arg4: memref<160x160xf32, #tpu.memory_space<vmem>>, %arg5: memref<160x1xf32, #tpu.memory_space<vmem>>, %arg6: memref<45x160xf32, #tpu.memory_space<vmem>>, %arg7: memref<45x1xf32, #tpu.memory_space<vmem>>, %arg8: memref<45x128xf32, #tpu.memory_space<vmem>>) attributes {dimension_semantics = [#tpu.dimension_semantics<parallel>], iteration_bounds = array<i64: 1>, scalar_prefetch = 0 : i64, scratch_operands = 0 : i64, tpu.core_type = #tpu.core_type<tc>, window_params = [{transform_indices = @transform_0, window_bounds = array<i64: 4, 128>}, {pipeline_mode = #tpu.pipeline_mode<synchronous>, transform_indices = @transform_1, window_bounds = array<i64: 160, 4>}, {pipeline_mode = #tpu.pipeline_mode<synchronous>, transform_indices = @transform_2, window_bounds = array<i64: 160, 1>}, {pipeline_mode = #tpu.pipeline_mode<synchronous>, transform_indices = @transform_3, window_bounds = array<i64: 160, 160>}, {pipeline_mode = #tpu.pipeline_mode<synchronous>, transform_indices = @transform_4, window_bounds = array<i64: 160, 1>}, {pipeline_mode = #tpu.pipeline_mode<synchronous>, transform_indices = @transform_5, window_bounds = array<i64: 45, 160>}, {pipeline_mode = #tpu.pipeline_mode<synchronous>, transform_indices = @transform_6, window_bounds = array<i64: 45, 1>}, {transform_indices = @transform_7, window_bounds = array<i64: 45, 128>}]} {
    %c0 = arith.constant 0 : index
    %c0_0 = arith.constant 0 : index
    %0 = vector.load %arg1[%c0, %c0_0] : memref<4x128xf32, #tpu.memory_space<vmem>>, vector<4x128xf32>
    %c0_1 = arith.constant 0 : index
    %c0_2 = arith.constant 0 : index
    %1 = vector.load %arg2[%c0_1, %c0_2] : memref<160x4xf32, #tpu.memory_space<vmem>>, vector<160x4xf32>
    %cst = arith.constant dense<0.000000e+00> : vector<160x128xf32>
    %2 = tpu.matmul %1, %0, %cst {dimension_numbers = #tpu.dot_dimension_numbers<[1], [0], [0], [1], [0, 0, 1, 1], [], []>} : vector<160x4xf32>, vector<4x128xf32>, vector<160x128xf32> -> vector<160x128xf32>
    %c0_3 = arith.constant 0 : index
    %c0_4 = arith.constant 0 : index
    %3 = vector.load %arg3[%c0_3, %c0_4] : memref<160x1xf32, #tpu.memory_space<vmem>>, vector<160x1xf32>
    %4 = vector.broadcast %3 : vector<160x1xf32> to vector<160x128xf32>
    %5 = arith.addf %2, %4 : vector<160x128xf32>
    %6 = math.tanh %5 : vector<160x128xf32>
    %c0_5 = arith.constant 0 : index
    %c0_6 = arith.constant 0 : index
    %7 = vector.load %arg4[%c0_5, %c0_6] : memref<160x160xf32, #tpu.memory_space<vmem>>, vector<160x160xf32>
    %cst_7 = arith.constant dense<0.000000e+00> : vector<160x128xf32>
    %8 = tpu.matmul %7, %6, %cst_7 {dimension_numbers = #tpu.dot_dimension_numbers<[1], [0], [0], [1], [0, 0, 1, 1], [], []>} : vector<160x160xf32>, vector<160x128xf32>, vector<160x128xf32> -> vector<160x128xf32>
    %c0_8 = arith.constant 0 : index
    %c0_9 = arith.constant 0 : index
    %9 = vector.load %arg5[%c0_8, %c0_9] : memref<160x1xf32, #tpu.memory_space<vmem>>, vector<160x1xf32>
    %10 = vector.broadcast %9 : vector<160x1xf32> to vector<160x128xf32>
    %11 = arith.addf %8, %10 : vector<160x128xf32>
    %12 = math.tanh %11 : vector<160x128xf32>
    %c0_10 = arith.constant 0 : index
    %c0_11 = arith.constant 0 : index
    %13 = vector.load %arg6[%c0_10, %c0_11] : memref<45x160xf32, #tpu.memory_space<vmem>>, vector<45x160xf32>
    %cst_12 = arith.constant dense<0.000000e+00> : vector<45x128xf32>
    %14 = tpu.matmul %13, %12, %cst_12 {dimension_numbers = #tpu.dot_dimension_numbers<[1], [0], [0], [1], [0, 0, 1, 1], [], []>} : vector<45x160xf32>, vector<160x128xf32>, vector<45x128xf32> -> vector<45x128xf32>
    %c0_13 = arith.constant 0 : index
    %c0_14 = arith.constant 0 : index
    %15 = vector.load %arg7[%c0_13, %c0_14] : memref<45x1xf32, #tpu.memory_space<vmem>>, vector<45x1xf32>
    %16 = vector.broadcast %15 : vector<45x1xf32> to vector<45x128xf32>
    %17 = arith.addf %14, %16 : vector<45x128xf32>
    %c0_15 = arith.constant 0 : index
    %c0_16 = arith.constant 0 : index
    %18 = vector.load %arg8[%c0_15, %c0_16] : memref<45x128xf32, #tpu.memory_space<vmem>>, vector<45x128xf32>
    tpu.vector_store %arg8[%c0_15, %c0_16], %17 {strides = array<i32>} : memref<45x128xf32, #tpu.memory_space<vmem>>, vector<45x128xf32>,
    return
  }
  func.func @transform_0(%arg0: i32) -> (i32, i32) {
    %c0_i32 = arith.constant 0 : i32
    %c0_i32_0 = arith.constant 0 : i32
    return %c0_i32, %arg0 : i32, i32
  }
  func.func @transform_1(%arg0: i32) -> (i32, i32) {
    %c0_i32 = arith.constant 0 : i32
    %c0_i32_0 = arith.constant 0 : i32
    %c0_i32_1 = arith.constant 0 : i32
    return %c0_i32, %c0_i32_0 : i32, i32
  }
  func.func @transform_2(%arg0: i32) -> (i32, i32) {
    %c0_i32 = arith.constant 0 : i32
    %c0_i32_0 = arith.constant 0 : i32
    %c0_i32_1 = arith.constant 0 : i32
    return %c0_i32, %c0_i32_0 : i32, i32
  }
  func.func @transform_3(%arg0: i32) -> (i32, i32) {
    %c0_i32 = arith.constant 0 : i32
    %c0_i32_0 = arith.constant 0 : i32
    %c0_i32_1 = arith.constant 0 : i32
    return %c0_i32, %c0_i32_0 : i32, i32
  }
  func.func @transform_4(%arg0: i32) -> (i32, i32) {
    %c0_i32 = arith.constant 0 : i32
    %c0_i32_0 = arith.constant 0 : i32
    %c0_i32_1 = arith.constant 0 : i32
    return %c0_i32, %c0_i32_0 : i32, i32
  }
  func.func @transform_5(%arg0: i32) -> (i32, i32) {
    %c0_i32 = arith.constant 0 : i32
    %c0_i32_0 = arith.constant 0 : i32
    %c0_i32_1 = arith.constant 0 : i32
    return %c0_i32, %c0_i32_0 : i32, i32
  }
  func.func @transform_6(%arg0: i32) -> (i32, i32) {
    %c0_i32 = arith.constant 0 : i32
    %c0_i32_0 = arith.constant 0 : i32
    %c0_i32_1 = arith.constant 0 : i32
    return %c0_i32, %c0_i32_0 : i32, i32
  }
  func.func @transform_7(%arg0: i32) -> (i32, i32) {
    %c0_i32 = arith.constant 0 : i32
    %c0_i32_0 = arith.constant 0 : i32
    return %c0_i32, %arg0 : i32, i32
  }
}

</mosaic_0001>

<bundles_post_ra>
// kernel: three_bus_pn_forward.1
= control target key start
LH: loop header
LB: loop body
LE: loop exit
PB: predicated region body
PF: predicated region fallthrough
CT: control target
= control target key end

     0   :  { %vm228_vm0 = vcmask 1043456   ;;  %vm167_vm1 = vcmask 31744   ;;  %v1238_v0 = vmov 0   ;;  %vm577_vm2 = vcmask 261120   ;;  %s1723_s2 = inlined_call_operand.vmem [shape: f32[160,1], index: 2, kind: input, shape index: {}]   ;;  %s1724_s0 = inlined_call_operand.vmem [shape: f32[4,128], index: 0, kind: input, shape index: {}]   ;;  %s1725_s1 = inlined_call_operand.vmem [shape: f32[160,4], index: 1, kind: input, shape index: {}]   ;;  %s1726_s4 = inlined_call_operand.vmem [shape: f32[160,1], index: 4, kind: input, shape index: {}]   ;;  %s1727_s6 = inlined_call_operand.vmem [shape: f32[45,1], index: 6, kind: input, shape index: {}]   ;;  %s1728_s3 = inlined_call_operand.vmem [shape: f32[160,160], index: 3, kind: input, shape index: {}]   ;;  %s1729_s5 = inlined_call_operand.vmem [shape: f32[45,160], index: 5, kind: input, shape index: {}]   ;;  %s1730_s7 = inlined_call_operand.vmem [shape: f32[45,128], index: 7, kind: output, shape index: {}]  }
   0x1   :  { %1157 = vset.pattern.permute.xlu1 %v1238_v0  ;;  %1156 = vset.pattern.permute.xlu0 %v1238_v0  ;;  %v49_v1 = vld [vmem:[%s1723_s2 + $0x10] sm:$0xff]  ;;  %v47_v2 = vld [vmem:[%s1723_s2] sm:$0xff]  ;;  %v28_v5 = vld [vmem:[%s1725_s1 + $0x8] sm:$0xff] }
   0x2   :  { %v26_v3 = vld [vmem:[%s1724_s0] sm:$0xf]  ;;  %79 = vperm.xlu1 %1157, %v49_v1   ;;  %69 = vperm.xlu0 %1156, %v47_v2   ;;  %v50_v6 = vld [vmem:[%s1723_s2 + $0x18] sm:$0xff]  ;;  %v48_v7 = vld [vmem:[%s1723_s2 + $0x8] sm:$0xff] }
   0x3   :  { %v27_v4 = vld [vmem:[%s1725_s1] sm:$0xff]  ;;  %1062 = vmatprep.subr.msk.mxu0 %vm228_vm0, %v26_v3  ;;  %v29_v8 = vld [vmem:[%s1725_s1 + $0x10] sm:$0xff]  ;;  %v30_v9 = vld [vmem:[%s1725_s1 + $0x18] sm:$0xff] }
   0x4   :  { %1064 = vmatprep.mubr.msk.f32.mxu0 %vm167_vm1, %v27_v4  ;;  %1063 = vmatpush3.msk.msra.mxu0 %vm228_vm0, %v26_v3  ;;  %v52_v10 = vld [vmem:[%s1723_s2 + $0x28] sm:$0xff]  ;;  %v51_v11 = vld [vmem:[%s1723_s2 + $0x20] sm:$0xff]  ;;  %v54_v14 = vld [vmem:[%s1723_s2 + $0x38] sm:$0xff]  ;;  %v1239_v4 = vmov 0.0|0.0  }
   0x5   :  { %1065 = vmatmul.mubr.msk.f32.vlgmr.msra.gmra.mrb[0].mxu0 %vm167_vm1, %v28_v5  ;;  %v31_v12 = vld [vmem:[%s1725_s1 + $0x20] sm:$0xff]  ;;  %v32_v13 = vld [vmem:[%s1725_s1 + $0x28] sm:$0xff]  ;;  %v53_v15 = vld [vmem:[%s1723_s2 + $0x30] sm:$0xff]  ;;  %1094 = vmatprep.subr.bf16.mxu1 %v1239_v4 }
   0x6   :  { %84 = vperm.xlu1 %1157, %v50_v6   ;;  %74 = vperm.xlu0 %1156, %v48_v7   ;;  %v33_v16 = vld [vmem:[%s1725_s1 + $0x30] sm:$0xff]  ;;  %v34_v17 = vld [vmem:[%s1725_s1 + $0x38] sm:$0xff]  ;;  %v56_v18 = vld [vmem:[%s1723_s2 + $0x48] sm:$0xff] }
   0x7   :  { %1067 = vmatprep.mubr.msk.f32.mxu0 %vm167_vm1, %v29_v8  ;;  %v55_v19 = vld [vmem:[%s1723_s2 + $0x40] sm:$0xff]  ;;  %v36_v21 = vld [vmem:[%s1725_s1 + $0x48] sm:$0xff]  ;;  %v58_v22 = vld [vmem:[%s1723_s2 + $0x58] sm:$0xff]  ;;  %1124 = vmatprep.subr.bf16.mxu0 %v1239_v4 }
   0x8   :  { %v35_v20 = vld [vmem:[%s1725_s1 + $0x40] sm:$0xff]  ;;  %v57_v23 = vld [vmem:[%s1723_s2 + $0x50] sm:$0xff]  ;;  %v38_v25 = vld [vmem:[%s1725_s1 + $0x58] sm:$0xff] }
   0x9   :  { %1068 = vmatmul.mubr.msk.f32.gmra.mrb[2].mxu0 %vm167_vm1, %v30_v9  ;;  %v37_v24 = vld [vmem:[%s1725_s1 + $0x50] sm:$0xff]  ;;  %v60_v26 = vld [vmem:[%s1723_s2 + $0x68] sm:$0xff]  ;;  %v59_v27 = vld [vmem:[%s1723_s2 + $0x60] sm:$0xff] }
   0xa   :  { %94 = vperm.xlu1 %1157, %v52_v10   ;;  %89 = vperm.xlu0 %1156, %v51_v11   ;;  %v39_v28 = vld [vmem:[%s1725_s1 + $0x60] sm:$0xff]  ;;  %v40_v29 = vld [vmem:[%s1725_s1 + $0x68] sm:$0xff]  ;;  %v62_v30 = vld [vmem:[%s1723_s2 + $0x78] sm:$0xff] }
   0xb   :  { %1070 = vmatprep.mubr.msk.f32.mxu0 %vm167_vm1, %v31_v12  ;;  %v61_v31 = vld [vmem:[%s1723_s2 + $0x70] sm:$0xff]  ;;  %v42_v33 = vld [vmem:[%s1725_s1 + $0x78] sm:$0xff]  ;;  %v64_v34 = vld [vmem:[%s1723_s2 + $0x88] sm:$0xff] }
   0xc   :  { %v41_v32 = vld [vmem:[%s1725_s1 + $0x70] sm:$0xff]  ;;  %v63_v35 = vld [vmem:[%s1723_s2 + $0x80] sm:$0xff]  ;;  %v44_v37 = vld [vmem:[%s1725_s1 + $0x88] sm:$0xff] }
   0xd   :  { %1071 = vmatmul.mubr.msk.f32.gmra.mrb[4].mxu0 %vm167_vm1, %v32_v13  ;;  %v43_v36 = vld [vmem:[%s1725_s1 + $0x80] sm:$0xff]  ;;  %v66_v38 = vld [vmem:[%s1723_s2 + $0x98] sm:$0xff]  ;;  %v65_v39 = vld [vmem:[%s1723_s2 + $0x90] sm:$0xff] }
   0xe   :  { %104 = vperm.xlu1 %1157, %v54_v14   ;;  %99 = vperm.xlu0 %1156, %v53_v15   ;;  %v45_v40 = vld [vmem:[%s1725_s1 + $0x90] sm:$0xff]  ;;  %v46_v41 = vld [vmem:[%s1725_s1 + $0x98] sm:$0xff]  ;;  %v458_v42 = vld [vmem:[%s1726_s4 + $0x8] sm:$0xff] }
   0xf   :  { %1073 = vmatprep.mubr.msk.f32.mxu0 %vm167_vm1, %v33_v16  ;;  %v457_v43 = vld [vmem:[%s1726_s4] sm:$0xff]  ;;  %v460_v44 = vld [vmem:[%s1726_s4 + $0x18] sm:$0xff]  ;;  %v459_v45 = vld [vmem:[%s1726_s4 + $0x10] sm:$0xff] }
  0x10   :  { %v462_v46 = vld [vmem:[%s1726_s4 + $0x28] sm:$0xff]  ;;  %v461_v47 = vld [vmem:[%s1726_s4 + $0x20] sm:$0xff]  ;;  %v464_v48 = vld [vmem:[%s1726_s4 + $0x38] sm:$0xff] }
  0x11   :  { %1074 = vmatmul.mubr.msk.f32.gmra.mrb[6].mxu0 %vm167_vm1, %v34_v17  ;;  %v463_v49 = vld [vmem:[%s1726_s4 + $0x30] sm:$0xff]  ;;  %v466_v50 = vld [vmem:[%s1726_s4 + $0x48] sm:$0xff]  ;;  %v465_v51 = vld [vmem:[%s1726_s4 + $0x40] sm:$0xff] }
  0x12   :  { %114 = vperm.xlu1 %1157, %v56_v18   ;;  %109 = vperm.xlu0 %1156, %v55_v19   ;;  %v468_v52 = vld [vmem:[%s1726_s4 + $0x58] sm:$0xff]  ;;  %v467_v53 = vld [vmem:[%s1726_s4 + $0x50] sm:$0xff]  ;;  %v470_v54 = vld [vmem:[%s1726_s4 + $0x68] sm:$0xff] }
  0x13   :  { %1076 = vmatprep.mubr.msk.f32.mxu0 %vm167_vm1, %v35_v20  ;;  %v469_v55 = vld [vmem:[%s1726_s4 + $0x60] sm:$0xff]  ;;  %v472_v56 = vld [vmem:[%s1726_s4 + $0x78] sm:$0xff]  ;;  %v471_v57 = vld [vmem:[%s1726_s4 + $0x70] sm:$0xff] }
  0x14   :  { %v474_v58 = vld [vmem:[%s1726_s4 + $0x88] sm:$0xff]  ;;  %v473_v59 = vld [vmem:[%s1726_s4 + $0x80] sm:$0xff]  ;;  %v476_v60 = vld [vmem:[%s1726_s4 + $0x98] sm:$0xff] }
  0x15   :  { %1077 = vmatmul.mubr.msk.f32.gmra.mrb[8].mxu0 %vm167_vm1, %v36_v21  ;;  %v475_v61 = vld [vmem:[%s1726_s4 + $0x90] sm:$0xff]  ;;  %v836_v62 = vld [vmem:[%s1727_s6 + $0x8] sm:$0xff]  ;;  %v835_v63 = vld [vmem:[%s1727_s6] sm:$0xff] }
  0x16   :  { %124 = vperm.xlu1 %1157, %v58_v22   ;;  %119 = vperm.xlu0 %1156, %v57_v23   ;;  %v838_v0 = vld [vmem:[%s1727_s6 + $0x18] sm:$0xff]  ;;  %v837_v1 = vld [vmem:[%s1727_s6 + $0x10] sm:$0xff]  ;;  %v840_v2 = vld [vmem:[%s1727_s6 + $0x28] sm:$0x1f] }
  0x17   :  { %1079 = vmatprep.mubr.msk.f32.mxu0 %vm167_vm1, %v37_v24  ;;  %v839_v3 = vld [vmem:[%s1727_s6 + $0x20] sm:$0xff]  ;;  %v418_v5 = vld [vmem:[%s1728_s3 + $0x8] sm:$0xff] }
  0x18   :  { %1015 = vmatprep.mubr.msk.f32.mxu1 %vm577_vm2, %v418_v5 }
  0x19   :  { %1080 = vmatmul.mubr.msk.f32.gmra.mrb[10].mxu0 %vm167_vm1, %v38_v25 }
  0x1a   :  { %134 = vperm.xlu1 %1157, %v60_v26   ;;  %129 = vperm.xlu0 %1156, %v59_v27  }
  0x1b   :  { %1082 = vmatprep.mubr.msk.f32.mxu0 %vm167_vm1, %v39_v28 }
  0x1d   :  { %1083 = vmatmul.mubr.msk.f32.gmra.mrb[12].mxu0 %vm167_vm1, %v40_v29 }
  0x1e   :  { %144 = vperm.xlu1 %1157, %v62_v30   ;;  %139 = vperm.xlu0 %1156, %v61_v31  }
  0x1f   :  { %1085 = vmatprep.mubr.msk.f32.mxu0 %vm167_vm1, %v41_v32 }
  0x21   :  { %1086 = vmatmul.mubr.msk.f32.gmra.mrb[14].mxu0 %vm167_vm1, %v42_v33 }
  0x22   :  { %154 = vperm.xlu1 %1157, %v64_v34   ;;  %149 = vperm.xlu0 %1156, %v63_v35  }
  0x23   :  { %1088 = vmatprep.mubr.msk.f32.mxu0 %vm167_vm1, %v43_v36 }
  0x25   :  { %1089 = vmatmul.mubr.msk.f32.gmra.mrb[16].mxu0 %vm167_vm1, %v44_v37 }
  0x26   :  { %164 = vperm.xlu1 %1157, %v66_v38   ;;  %159 = vperm.xlu0 %1156, %v65_v39  }
  0x27   :  { %1091 = vmatprep.mubr.msk.f32.mxu0 %vm167_vm1, %v45_v40 }
  0x29   :  { %1092 = vmatmul.mubr.msk.f32.gmra.mrb[18].mxu0 %vm167_vm1, %v46_v41 }
  0x2a   :  { %484 = vperm.xlu1 %1157, %v458_v42   ;;  %479 = vperm.xlu0 %1156, %v457_v43  }
  0x2e   :  { %494 = vperm.xlu1 %1157, %v460_v44   ;;  %489 = vperm.xlu0 %1156, %v459_v45  }
  0x32   :  { %504 = vperm.xlu1 %1157, %v462_v46   ;;  %499 = vperm.xlu0 %1156, %v461_v47  }
  0x36   :  { %514 = vperm.xlu1 %1157, %v464_v48   ;;  %509 = vperm.xlu0 %1156, %v463_v49  }
  0x3a   :  { %524 = vperm.xlu1 %1157, %v466_v50   ;;  %519 = vperm.xlu0 %1156, %v465_v51  }
  0x3e   :  { %534 = vperm.xlu1 %1157, %v468_v52   ;;  %529 = vperm.xlu0 %1156, %v467_v53  }
  0x42   :  { %544 = vperm.xlu1 %1157, %v470_v54   ;;  %539 = vperm.xlu0 %1156, %v469_v55  }
  0x46   :  { %554 = vperm.xlu1 %1157, %v472_v56   ;;  %549 = vperm.xlu0 %1156, %v471_v57  }
  0x4a   :  { %564 = vperm.xlu1 %1157, %v474_v58   ;;  %559 = vperm.xlu0 %1156, %v473_v59  }
  0x4e   :  { %574 = vperm.xlu1 %1157, %v476_v60   ;;  %569 = vperm.xlu0 %1156, %v475_v61  }
  0x52   :  { %848 = vperm.xlu1 %1157, %v836_v62   ;;  %843 = vperm.xlu0 %1156, %v835_v63  }
  0x56   :  { %858 = vperm.xlu1 %1157, %v838_v0   ;;  %853 = vperm.xlu0 %1156, %v837_v1  }
  0x5a   :  { %868 = vperm.xlu1 %1157, %v840_v2   ;;  %863 = vperm.xlu0 %1156, %v839_v3  }
  0x81   :  { %v80_v6 = vpop.permute.xlu1 %79  ;;  %v70_v7 = vpop.permute.xlu0 %69 }
  0x85   :  { %v85_v8 = vpop.permute.xlu1 %84  ;;  %v75_v9 = vpop.permute.xlu0 %74 }
  0x89   :  { %v95_v10 = vpop.permute.xlu1 %94  ;;  %v90_v11 = vpop.permute.xlu0 %89 }
  0x8d   :  { %v105_v12 = vpop.permute.xlu1 %104  ;;  %v100_v14 = vpop.permute.xlu0 %99 }
  0x91   :  { %v115_v21 = vpop.permute.xlu1 %114  ;;  %v110_v23 = vpop.permute.xlu0 %109 }
  0x95   :  { %v125_v28 = vpop.permute.xlu1 %124  ;;  %v120_v31 = vpop.permute.xlu0 %119 }
  0x99   :  { %v135_v42 = vpop.permute.xlu1 %134  ;;  %v130_v44 = vpop.permute.xlu0 %129 }
  0x9d   :  { %v145_v53 = vpop.permute.xlu1 %144  ;;  %v140_v56 = vpop.permute.xlu0 %139 }
  0xa1   :  { %v155_v3 = vpop.permute.xlu1 %154 }
  0xd8   :  { %v1066_v13 = vpop.f32.mrb[0].mxu0 }
  0xd9   :  { %v304_v15 = vadd.f32 %v1066_v13, %v75_v9  ;;  %v298_v16 = vpop.f32.mrb[1].mxu0 }
  0xda   :  { %v299_v17 = vadd.f32 %v298_v16, %v70_v7 }
  0xdb   :  { %1158 = vtanh.f32 %v304_v15  ;;  %v165_v15 = vpop.permute.xlu1 %164 }
  0xdc   :  { %1160 = vtanh.f32 %v299_v17  ;;  %v1069_v18 = vpop.f32.mrb[2].mxu0 }
  0xdd   :  { %v314_v19 = vadd.f32 %v1069_v18, %v85_v8  ;;  %v308_v20 = vpop.f32.mrb[3].mxu0 }
  0xde   :  { %v309_v22 = vadd.f32 %v308_v20, %v80_v6  ;;  %v150_v6 = vpop.permute.xlu0 %149 }
  0xdf   :  { %1162 = vtanh.f32 %v314_v19 }
  0xe0   :  { %1164 = vtanh.f32 %v309_v22  ;;  %v1072_v24 = vpop.f32.mrb[4].mxu0 }
  0xe1   :  { %v324_v25 = vadd.f32 %v1072_v24, %v95_v10  ;;  %v318_v26 = vpop.f32.mrb[5].mxu0 }
  0xe2   :  { %v319_v27 = vadd.f32 %v318_v26, %v90_v11  ;;  %v160_v18 = vpop.permute.xlu0 %159 }
  0xe3   :  { %1166 = vtanh.f32 %v324_v25 }
  0xe4   :  { %1168 = vtanh.f32 %v319_v27  ;;  %v1075_v29 = vpop.f32.mrb[6].mxu0 }
  0xe5   :  { %v1159_v30 = vpop.eup %1158  ;;  %v334_v32 = vadd.f32 %v1075_v29, %v105_v12  ;;  %v328_v33 = vpop.f32.mrb[7].mxu0 }
  0xe6   :  { %v1161_v34 = vpop.eup %1160  ;;  %v329_v35 = vadd.f32 %v328_v33, %v100_v14  ;;  %v417_v33 = vld [vmem:[%s1728_s3] sm:$0xff] }
  0xe7   :  { %1170 = vtanh.f32 %v334_v32  ;;  %v1095_v36 = vpack.c.bf16 %v1159_v30, %v1161_v34  ;;  %v420_v34 = vld [vmem:[%s1728_s3 + $0x18] sm:$0xff] }
  0xe8   :  { %1172 = vtanh.f32 %v329_v35  ;;  %v1078_v37 = vpop.f32.mrb[8].mxu0  ;;  %v419_v35 = vld [vmem:[%s1728_s3 + $0x10] sm:$0xff] }
  0xe9   :  { %v1163_v38 = vpop.eup %1162  ;;  %v344_v39 = vadd.f32 %v1078_v37, %v115_v21  ;;  %v338_v40 = vpop.f32.mrb[9].mxu0  ;;  %1096 = vmatpush1.bf16.msra.mxu1 %v1095_v36  ;;  %v422_v36 = vld [vmem:[%s1728_s3 + $0x28] sm:$0xff]  ;;  %v421_v37 = vld [vmem:[%s1728_s3 + $0x20] sm:$0xff] }
  0xea   :  { %v1165_v41 = vpop.eup %1164  ;;  %v339_v43 = vadd.f32 %v338_v40, %v110_v23  ;;  %1097 = vmatprep.subr.bf16.mxu1 %v1239_v4  ;;  %v426_v40 = vld [vmem:[%s1728_s3 + $0x48] sm:$0xff] }
  0xeb   :  { %1174 = vtanh.f32 %v344_v39  ;;  %v1098_v45 = vpack.c.bf16 %v1163_v38, %v1165_v41  ;;  %v424_v38 = vld [vmem:[%s1728_s3 + $0x38] sm:$0xff]  ;;  %v423_v39 = vld [vmem:[%s1728_s3 + $0x30] sm:$0xff]  ;;  %v425_v41 = vld [vmem:[%s1728_s3 + $0x40] sm:$0xff] }
  0xec   :  { %1176 = vtanh.f32 %v339_v43  ;;  %v1081_v46 = vpop.f32.mrb[10].mxu0  ;;  %v427_v43 = vld [vmem:[%s1728_s3 + $0x50] sm:$0xff] }
  0xed   :  { %v1167_v47 = vpop.eup %1166  ;;  %v354_v48 = vadd.f32 %v1081_v46, %v125_v28  ;;  %v348_v49 = vpop.f32.mrb[11].mxu0  ;;  %1099 = vmatpush1.bf16.msra.mxu1 %v1098_v45  ;;  %v429_v45 = vld [vmem:[%s1728_s3 + $0x60] sm:$0xff]  ;;  %v432_v46 = vld [vmem:[%s1728_s3 + $0x78] sm:$0xff] }
  0xee   :  { %v1169_v50 = vpop.eup %1168  ;;  %v349_v51 = vadd.f32 %v348_v49, %v120_v31  ;;  %1100 = vmatprep.subr.bf16.mxu1 %v1239_v4  ;;  %v433_v49 = vld [vmem:[%s1728_s3 + $0x80] sm:$0xff] }
  0xef   :  { %1178 = vtanh.f32 %v354_v48  ;;  %v1101_v52 = vpack.c.bf16 %v1167_v47, %v1169_v50  ;;  %v431_v47 = vld [vmem:[%s1728_s3 + $0x70] sm:$0xff]  ;;  %v434_v48 = vld [vmem:[%s1728_s3 + $0x88] sm:$0xff]  ;;  %v436_v50 = vld [vmem:[%s1728_s3 + $0x98] sm:$0xff] }
  0xf0   :  { %1180 = vtanh.f32 %v349_v51  ;;  %v1084_v54 = vpop.f32.mrb[12].mxu0  ;;  %v435_v51 = vld [vmem:[%s1728_s3 + $0x90] sm:$0xff] }
  0xf1   :  { %v1171_v55 = vpop.eup %1170  ;;  %v364_v57 = vadd.f32 %v1084_v54, %v135_v42  ;;  %v358_v58 = vpop.f32.mrb[13].mxu0  ;;  %1102 = vmatpush1.bf16.msra.mxu1 %v1101_v52  ;;  %v428_v42 = vld [vmem:[%s1728_s3 + $0x58] sm:$0xff]  ;;  %v438_v52 = vld [vmem:[%s1728_s3 + $0xa8] sm:$0xff] }
  0xf2   :  { %v1173_v59 = vpop.eup %1172  ;;  %v359_v60 = vadd.f32 %v358_v58, %v130_v44  ;;  %1103 = vmatprep.subr.bf16.mxu1 %v1239_v4  ;;  %v430_v44 = vld [vmem:[%s1728_s3 + $0x68] sm:$0xff]  ;;  %v440_v54 = vld [vmem:[%s1728_s3 + $0xb8] sm:$0xff] }
  0xf3   :  { %1182 = vtanh.f32 %v364_v57  ;;  %v1104_v61 = vpack.c.bf16 %v1171_v55, %v1173_v59  ;;  %v439_v55 = vld [vmem:[%s1728_s3 + $0xb0] sm:$0xff]  ;;  %v441_v57 = vld [vmem:[%s1728_s3 + $0xc0] sm:$0xff]  ;;  %v444_v58 = vld [vmem:[%s1728_s3 + $0xd8] sm:$0xff] }
  0xf4   :  { %1184 = vtanh.f32 %v359_v60  ;;  %v1087_v62 = vpop.f32.mrb[14].mxu0  ;;  %v443_v59 = vld [vmem:[%s1728_s3 + $0xd0] sm:$0xff]  ;;  %v446_v60 = vld [vmem:[%s1728_s3 + $0xe8] sm:$0xff] }
  0xf5   :  { %v1175_v63 = vpop.eup %1174  ;;  %v374_v0 = vadd.f32 %v1087_v62, %v145_v53  ;;  %v368_v1 = vpop.f32.mrb[15].mxu0  ;;  %1105 = vmatpush1.bf16.msra.mxu1 %v1104_v61  ;;  %v437_v53 = vld [vmem:[%s1728_s3 + $0xa0] sm:$0xff]  ;;  %v448_v62 = vld [vmem:[%s1728_s3 + $0xf8] sm:$0xff] }
  0xf6   :  { %v1177_v2 = vpop.eup %1176  ;;  %v369_v5 = vadd.f32 %v368_v1, %v140_v56  ;;  %1106 = vmatprep.subr.bf16.mxu1 %v1239_v4  ;;  %v442_v56 = vld [vmem:[%s1728_s3 + $0xc8] sm:$0xff]  ;;  %v445_v61 = vld [vmem:[%s1728_s3 + $0xe0] sm:$0xff] }
  0xf7   :  { %1186 = vtanh.f32 %v374_v0  ;;  %v1107_v7 = vpack.c.bf16 %v1175_v63, %v1177_v2  ;;  %v447_v63 = vld [vmem:[%s1728_s3 + $0xf0] sm:$0xff]  ;;  %v450_v0 = vld [vmem:[%s1728_s3 + $0x108] sm:$0xff]  ;;  %v449_v1 = vld [vmem:[%s1728_s3 + $0x100] sm:$0xff] }
  0xf8   :  { %1188 = vtanh.f32 %v369_v5  ;;  %v1090_v8 = vpop.f32.mrb[16].mxu0  ;;  %v452_v2 = vld [vmem:[%s1728_s3 + $0x118] sm:$0xff]  ;;  %v454_v5 = vld [vmem:[%s1728_s3 + $0x128] sm:$0xff] }
  0xf9   :  { %v1179_v9 = vpop.eup %1178  ;;  %v384_v10 = vadd.f32 %v1090_v8, %v155_v3  ;;  %v378_v11 = vpop.f32.mrb[17].mxu0  ;;  %1108 = vmatpush1.bf16.msra.mxu1 %v1107_v7  ;;  %v451_v3 = vld [vmem:[%s1728_s3 + $0x110] sm:$0xff]  ;;  %v456_v7 = vld [vmem:[%s1728_s3 + $0x138] sm:$0xff] }
  0xfa   :  { %v1181_v12 = vpop.eup %1180  ;;  %v379_v13 = vadd.f32 %v378_v11, %v150_v6  ;;  %1109 = vmatprep.subr.bf16.mxu1 %v1239_v4  ;;  %v453_v6 = vld [vmem:[%s1728_s3 + $0x120] sm:$0xff]  ;;  %v455_v8 = vld [vmem:[%s1728_s3 + $0x130] sm:$0xff]  ;;  %v480_v11 = vpop.permute.xlu0 %479 }
  0xfb   :  { %1190 = vtanh.f32 %v384_v10  ;;  %v1110_v14 = vpack.c.bf16 %v1179_v9, %v1181_v12  ;;  %v824_v9 = vld [vmem:[%s1729_s5 + $0x8] sm:$0xff] }
  0xfc   :  { %1192 = vtanh.f32 %v379_v13  ;;  %v1093_v16 = vpop.f32.mrb[18].mxu0  ;;  %1035 = vmatprep.mubr.msk.f32.mxu0 %vm577_vm2, %v824_v9 }
  0xfd   :  { %v1183_v17 = vpop.eup %1182  ;;  %v394_v19 = vadd.f32 %v1093_v16, %v165_v15  ;;  %v388_v20 = vpop.f32.mrb[19].mxu0  ;;  %1111 = vmatpush1.bf16.msra.mxu1 %v1110_v14 }
  0xfe   :  { %v1185_v21 = vpop.eup %1184  ;;  %v389_v22 = vadd.f32 %v388_v20, %v160_v18  ;;  %1112 = vmatprep.subr.bf16.mxu1 %v1239_v4  ;;  %v485_v14 = vpop.permute.xlu1 %484 }
  0xff   :  { %1194 = vtanh.f32 %v394_v19  ;;  %v1113_v23 = vpack.c.bf16 %v1183_v17, %v1185_v21  ;;  %v490_v19 = vpop.permute.xlu0 %489 }
 0x100   :  { %1196 = vtanh.f32 %v389_v22 }
 0x101   :  { %v1187_v24 = vpop.eup %1186  ;;  %1114 = vmatpush1.bf16.msra.mxu1 %v1113_v23 }
 0x102   :  { %v1189_v25 = vpop.eup %1188  ;;  %1115 = vmatprep.subr.bf16.mxu1 %v1239_v4  ;;  %v495_v22 = vpop.permute.xlu1 %494 }
 0x103   :  { %v1116_v26 = vpack.c.bf16 %v1187_v24, %v1189_v25 }
 0x105   :  { %v1191_v27 = vpop.eup %1190  ;;  %1117 = vmatpush1.bf16.msra.mxu1 %v1116_v26 }
 0x106   :  { %v1193_v28 = vpop.eup %1192  ;;  %1118 = vmatprep.subr.bf16.mxu1 %v1239_v4 }
 0x107   :  { %v1119_v29 = vpack.c.bf16 %v1191_v27, %v1193_v28 }
 0x109   :  { %v1195_v30 = vpop.eup %1194  ;;  %1120 = vmatpush1.bf16.msra.mxu1 %v1119_v29  ;;  %v500_v29 = vpop.permute.xlu0 %499 }
 0x10a   :  { %v1197_v31 = vpop.eup %1196  ;;  %1121 = vmatprep.subr.bf16.mxu1 %v1239_v4 }
 0x10b   :  { %v1122_v32 = vpack.c.bf16 %v1195_v30, %v1197_v31 }
 0x10d   :  { %1123 = vmatpush1.bf16.msra.mxu1 %v1122_v32 }
 0x110   :  { %703 = vmatmul.mubr.f32.vlgmr.msra.gmra.mrb[0].mxu1 %v417_v33  ;;  %v505_v33 = vpop.permute.xlu1 %504 }
 0x111   :  { %1016 = vmatprep.mubr.msk.f32.mxu1 %vm577_vm2, %v420_v34 }
 0x114   :  { %708 = vmatmul.mubr.f32.gmra.mrb[2].mxu1 %v419_v35 }
 0x115   :  { %1017 = vmatprep.mubr.msk.f32.mxu1 %vm577_vm2, %v422_v36 }
 0x118   :  { %713 = vmatmul.mubr.f32.gmra.mrb[4].mxu1 %v421_v37 }
 0x119   :  { %1018 = vmatprep.mubr.msk.f32.mxu1 %vm577_vm2, %v424_v38 }
 0x11c   :  { %718 = vmatmul.mubr.f32.gmra.mrb[6].mxu1 %v423_v39 }
 0x11d   :  { %1019 = vmatprep.mubr.msk.f32.mxu1 %vm577_vm2, %v426_v40  ;;  %v510_v40 = vpop.permute.xlu0 %509 }
 0x120   :  { %723 = vmatmul.mubr.f32.gmra.mrb[8].mxu1 %v425_v41 }
 0x121   :  { %1020 = vmatprep.mubr.msk.f32.mxu1 %vm577_vm2, %v428_v42 }
 0x124   :  { %728 = vmatmul.mubr.f32.gmra.mrb[10].mxu1 %v427_v43 }
 0x125   :  { %1021 = vmatprep.mubr.msk.f32.mxu1 %vm577_vm2, %v430_v44  ;;  %v515_v44 = vpop.permute.xlu1 %514 }
 0x128   :  { %733 = vmatmul.mubr.f32.gmra.mrb[12].mxu1 %v429_v45 }
 0x129   :  { %1022 = vmatprep.mubr.msk.f32.mxu1 %vm577_vm2, %v432_v46 }
 0x12c   :  { %738 = vmatmul.mubr.f32.gmra.mrb[14].mxu1 %v431_v47 }
 0x12d   :  { %1023 = vmatprep.mubr.msk.f32.mxu1 %vm577_vm2, %v434_v48 }
 0x130   :  { %743 = vmatmul.mubr.f32.gmra.mrb[16].mxu1 %v433_v49 }
 0x131   :  { %1024 = vmatprep.mubr.msk.f32.mxu1 %vm577_vm2, %v436_v50 }
 0x134   :  { %748 = vmatmul.mubr.f32.gmra.mrb[18].mxu1 %v435_v51  ;;  %v520_v51 = vpop.permute.xlu0 %519 }
 0x135   :  { %1025 = vmatprep.mubr.msk.f32.mxu1 %vm577_vm2, %v438_v52 }
 0x138   :  { %753 = vmatmul.mubr.f32.gmra.mrb[20].mxu1 %v437_v53 }
 0x139   :  { %1026 = vmatprep.mubr.msk.f32.mxu1 %vm577_vm2, %v440_v54 }
 0x13c   :  { %758 = vmatmul.mubr.f32.gmra.mrb[22].mxu1 %v439_v55  ;;  %v525_v55 = vpop.permute.xlu1 %524 }
 0x13d   :  { %1027 = vmatprep.mubr.msk.f32.mxu1 %vm577_vm2, %v442_v56 }
 0x140   :  { %763 = vmatmul.mubr.f32.gmra.mrb[24].mxu1 %v441_v57 }
 0x141   :  { %1028 = vmatprep.mubr.msk.f32.mxu1 %vm577_vm2, %v444_v58 }
 0x144   :  { %768 = vmatmul.mubr.f32.gmra.mrb[26].mxu1 %v443_v59 }
 0x145   :  { %1029 = vmatprep.mubr.msk.f32.mxu1 %vm577_vm2, %v446_v60 }
 0x148   :  { %773 = vmatmul.mubr.f32.gmra.mrb[28].mxu1 %v445_v61 }
 0x149   :  { %1030 = vmatprep.mubr.msk.f32.mxu1 %vm577_vm2, %v448_v62  ;;  %v530_v62 = vpop.permute.xlu0 %529 }
 0x14c   :  { %778 = vmatmul.mubr.f32.gmra.mrb[30].mxu1 %v447_v63 }
 0x14d   :  { %1031 = vmatprep.mubr.msk.f32.mxu1 %vm577_vm2, %v450_v0 }
 0x150   :  { %783 = vmatmul.mubr.f32.gmra.mrb[32].mxu1 %v449_v1 }
 0x151   :  { %1032 = vmatprep.mubr.msk.f32.mxu1 %vm577_vm2, %v452_v2  ;;  %v535_v2 = vpop.permute.xlu1 %534 }
 0x154   :  { %788 = vmatmul.mubr.f32.gmra.mrb[34].mxu1 %v451_v3 }
 0x155   :  { %1033 = vmatprep.mubr.msk.f32.mxu1 %vm577_vm2, %v454_v5 }
 0x158   :  { %793 = vmatmul.mubr.f32.gmra.mrb[36].mxu1 %v453_v6 }
 0x159   :  { %1034 = vmatprep.mubr.msk.f32.mxu1 %vm577_vm2, %v456_v7 }
 0x15c   :  { %798 = vmatmul.mubr.f32.gmra.mrb[38].mxu1 %v455_v8 }
 0x1e3   :  { %v704_v10 = vpop.f32.mrb[0].mxu1 }
 0x1e4   :  { %v706_v12 = vpop.f32.mrb[1].mxu1  ;;  %v705_v13 = vadd.f32 %v704_v10, %v480_v11  ;;  %v540_v10 = vpop.permute.xlu0 %539 }
 0x1e6   :  { %1198 = vtanh.f32 %v705_v13 }
 0x1e7   :  { %v709_v15 = vpop.f32.mrb[2].mxu1 }
 0x1e8   :  { %v710_v16 = vadd.f32 %v709_v15, %v485_v14  ;;  %v711_v17 = vpop.f32.mrb[3].mxu1  ;;  %v545_v14 = vpop.permute.xlu1 %544 }
 0x1ea   :  { %1200 = vtanh.f32 %v710_v16 }
 0x1eb   :  { %v714_v18 = vpop.f32.mrb[4].mxu1 }
 0x1ec   :  { %v716_v20 = vpop.f32.mrb[5].mxu1  ;;  %v715_v21 = vadd.f32 %v714_v18, %v490_v19 }
 0x1ee   :  { %1202 = vtanh.f32 %v715_v21  ;;  %v550_v21 = vpop.permute.xlu0 %549 }
 0x1ef   :  { %v719_v23 = vpop.f32.mrb[6].mxu1 }
 0x1f0   :  { %v720_v24 = vadd.f32 %v719_v23, %v495_v22  ;;  %v721_v25 = vpop.f32.mrb[7].mxu1  ;;  %v1199_v26 = vpop.eup %1198 }
 0x1f1   :  { %v555_v25 = vpop.permute.xlu1 %554 }
 0x1f2   :  { %1204 = vtanh.f32 %v720_v24 }
 0x1f3   :  { %v724_v27 = vpop.f32.mrb[8].mxu1 }
 0x1f4   :  { %v1201_v28 = vpop.eup %1200  ;;  %v726_v30 = vpop.f32.mrb[9].mxu1  ;;  %v725_v31 = vadd.f32 %v724_v27, %v500_v29 }
 0x1f5   :  { %v1125_v32 = vpack.c.bf16 %v1201_v28, %v1199_v26 }
 0x1f6   :  { %1206 = vtanh.f32 %v725_v31 }
 0x1f7   :  { %v729_v34 = vpop.f32.mrb[10].mxu1  ;;  %1126 = vmatpush1.bf16.msra.mxu0 %v1125_v32  ;;  %v560_v32 = vpop.permute.xlu0 %559 }
 0x1f8   :  { %v730_v35 = vadd.f32 %v729_v34, %v505_v33  ;;  %v731_v36 = vpop.f32.mrb[11].mxu1  ;;  %1127 = vmatprep.subr.bf16.mxu0 %v1239_v4  ;;  %v1203_v37 = vpop.eup %1202 }
 0x1f9   :  { %v565_v36 = vpop.permute.xlu1 %564 }
 0x1fa   :  { %1208 = vtanh.f32 %v730_v35 }
 0x1fb   :  { %v734_v38 = vpop.f32.mrb[12].mxu1 }
 0x1fc   :  { %v1205_v39 = vpop.eup %1204  ;;  %v736_v41 = vpop.f32.mrb[13].mxu1  ;;  %v735_v42 = vadd.f32 %v734_v38, %v510_v40 }
 0x1fd   :  { %v1128_v43 = vpack.c.bf16 %v1205_v39, %v1203_v37 }
 0x1fe   :  { %1210 = vtanh.f32 %v735_v42 }
 0x1ff   :  { %v739_v45 = vpop.f32.mrb[14].mxu1  ;;  %1129 = vmatpush1.bf16.msra.mxu0 %v1128_v43  ;;  %v570_v43 = vpop.permute.xlu0 %569 }
 0x200   :  { %v740_v46 = vadd.f32 %v739_v45, %v515_v44  ;;  %v741_v47 = vpop.f32.mrb[15].mxu1  ;;  %1130 = vmatprep.subr.bf16.mxu0 %v1239_v4  ;;  %v1207_v48 = vpop.eup %1206 }
 0x201   :  { %v575_v47 = vpop.permute.xlu1 %574 }
 0x202   :  { %1212 = vtanh.f32 %v740_v46 }
 0x203   :  { %v744_v49 = vpop.f32.mrb[16].mxu1 }
 0x204   :  { %v1209_v50 = vpop.eup %1208  ;;  %v746_v52 = vpop.f32.mrb[17].mxu1  ;;  %v745_v53 = vadd.f32 %v744_v49, %v520_v51 }
 0x205   :  { %v1131_v54 = vpack.c.bf16 %v1209_v50, %v1207_v48 }
 0x206   :  { %1214 = vtanh.f32 %v745_v53 }
 0x207   :  { %v749_v56 = vpop.f32.mrb[18].mxu1  ;;  %1132 = vmatpush1.bf16.msra.mxu0 %v1131_v54 }
 0x208   :  { %v750_v57 = vadd.f32 %v749_v56, %v525_v55  ;;  %v751_v58 = vpop.f32.mrb[19].mxu1  ;;  %1133 = vmatprep.subr.bf16.mxu0 %v1239_v4  ;;  %v1211_v59 = vpop.eup %1210 }
 0x209   :  { %v826_v58 = vld [vmem:[%s1729_s5 + $0x18] sm:$0xff] }
 0x20a   :  { %1216 = vtanh.f32 %v750_v57  ;;  %v823_v57 = vld [vmem:[%s1729_s5] sm:$0xff] }
 0x20b   :  { %v754_v60 = vpop.f32.mrb[20].mxu1 }
 0x20c   :  { %v1213_v61 = vpop.eup %1212  ;;  %v756_v63 = vpop.f32.mrb[21].mxu1  ;;  %v755_v0 = vadd.f32 %v754_v60, %v530_v62  ;;  %v827_v60 = vld [vmem:[%s1729_s5 + $0x20] sm:$0xff]  ;;  %v829_v62 = vld [vmem:[%s1729_s5 + $0x30] sm:$0xff] }
 0x20d   :  { %v1134_v1 = vpack.c.bf16 %v1213_v61, %v1211_v59  ;;  %v825_v59 = vld [vmem:[%s1729_s5 + $0x10] sm:$0xff]  ;;  %v830_v61 = vld [vmem:[%s1729_s5 + $0x38] sm:$0xff]  ;;  %v832_v63 = vld [vmem:[%s1729_s5 + $0x48] sm:$0xff] }
 0x20e   :  { %1218 = vtanh.f32 %v755_v0  ;;  %v831_v0 = vld [vmem:[%s1729_s5 + $0x40] sm:$0xff] }
 0x20f   :  { %v759_v3 = vpop.f32.mrb[22].mxu1  ;;  %1135 = vmatpush1.bf16.msra.mxu0 %v1134_v1  ;;  %v834_v1 = vld [vmem:[%s1729_s5 + $0x58] sm:$0x1f] }
 0x210   :  { %v760_v5 = vadd.f32 %v759_v3, %v535_v2  ;;  %v761_v6 = vpop.f32.mrb[23].mxu1  ;;  %1136 = vmatprep.subr.bf16.mxu0 %v1239_v4  ;;  %v1215_v7 = vpop.eup %1214  ;;  %v833_v2 = vld [vmem:[%s1729_s5 + $0x50] sm:$0x1f] }
 0x211   :  { %v844_v3 = vpop.permute.xlu0 %843 }
 0x212   :  { %1220 = vtanh.f32 %v760_v5 }
 0x213   :  { %v764_v8 = vpop.f32.mrb[24].mxu1 }
 0x214   :  { %v1217_v9 = vpop.eup %1216  ;;  %v766_v11 = vpop.f32.mrb[25].mxu1  ;;  %v765_v12 = vadd.f32 %v764_v8, %v540_v10 }
 0x215   :  { %v1137_v13 = vpack.c.bf16 %v1217_v9, %v1215_v7  ;;  %v849_v8 = vpop.permute.xlu1 %848 }
 0x216   :  { %1222 = vtanh.f32 %v765_v12  ;;  %v854_v12 = vpop.permute.xlu0 %853 }
 0x217   :  { %v769_v15 = vpop.f32.mrb[26].mxu1  ;;  %1138 = vmatpush1.bf16.msra.mxu0 %v1137_v13 }
 0x218   :  { %v770_v16 = vadd.f32 %v769_v15, %v545_v14  ;;  %v771_v17 = vpop.f32.mrb[27].mxu1  ;;  %1139 = vmatprep.subr.bf16.mxu0 %v1239_v4  ;;  %v1219_v18 = vpop.eup %1218 }
 0x21a   :  { %1224 = vtanh.f32 %v770_v16  ;;  %v859_v16 = vpop.permute.xlu1 %858 }
 0x21b   :  { %v774_v19 = vpop.f32.mrb[28].mxu1 }
 0x21c   :  { %v1221_v20 = vpop.eup %1220  ;;  %v776_v22 = vpop.f32.mrb[29].mxu1  ;;  %v775_v23 = vadd.f32 %v774_v19, %v550_v21 }
 0x21d   :  { %v1140_v24 = vpack.c.bf16 %v1221_v20, %v1219_v18  ;;  %v864_v20 = vpop.permute.xlu0 %863 }
 0x21e   :  { %1226 = vtanh.f32 %v775_v23 }
 0x21f   :  { %v779_v26 = vpop.f32.mrb[30].mxu1  ;;  %1141 = vmatpush1.bf16.msra.mxu0 %v1140_v24  ;;  %v869_v24 = vpop.permute.xlu1 %868 }
 0x220   :  { %v780_v27 = vadd.f32 %v779_v26, %v555_v25  ;;  %v781_v28 = vpop.f32.mrb[31].mxu1  ;;  %1142 = vmatprep.subr.bf16.mxu0 %v1239_v4  ;;  %v1223_v29 = vpop.eup %1222 }
 0x222   :  { %1228 = vtanh.f32 %v780_v27 }
 0x223   :  { %v784_v30 = vpop.f32.mrb[32].mxu1 }
 0x224   :  { %v1225_v31 = vpop.eup %1224  ;;  %v786_v33 = vpop.f32.mrb[33].mxu1  ;;  %v785_v34 = vadd.f32 %v784_v30, %v560_v32 }
 0x225   :  { %v1143_v35 = vpack.c.bf16 %v1225_v31, %v1223_v29 }
 0x226   :  { %1230 = vtanh.f32 %v785_v34 }
 0x227   :  { %v789_v37 = vpop.f32.mrb[34].mxu1  ;;  %1144 = vmatpush1.bf16.msra.mxu0 %v1143_v35 }
 0x228   :  { %v790_v38 = vadd.f32 %v789_v37, %v565_v36  ;;  %v791_v39 = vpop.f32.mrb[35].mxu1  ;;  %1145 = vmatprep.subr.bf16.mxu0 %v1239_v4  ;;  %v1227_v40 = vpop.eup %1226 }
 0x22a   :  { %1232 = vtanh.f32 %v790_v38 }
 0x22b   :  { %v794_v41 = vpop.f32.mrb[36].mxu1 }
 0x22c   :  { %v1229_v42 = vpop.eup %1228  ;;  %v796_v44 = vpop.f32.mrb[37].mxu1  ;;  %v795_v45 = vadd.f32 %v794_v41, %v570_v43 }
 0x22d   :  { %v1146_v46 = vpack.c.bf16 %v1229_v42, %v1227_v40 }
 0x22e   :  { %1234 = vtanh.f32 %v795_v45 }
 0x22f   :  { %v799_v48 = vpop.f32.mrb[38].mxu1  ;;  %1147 = vmatpush1.bf16.msra.mxu0 %v1146_v46 }
 0x230   :  { %v800_v49 = vadd.f32 %v799_v48, %v575_v47  ;;  %v801_v50 = vpop.f32.mrb[39].mxu1  ;;  %1148 = vmatprep.subr.bf16.mxu0 %v1239_v4  ;;  %v1231_v51 = vpop.eup %1230 }
 0x232   :  { %1236 = vtanh.f32 %v800_v49 }
 0x234   :  { %v1233_v52 = vpop.eup %1232 }
 0x235   :  { %v1149_v53 = vpack.c.bf16 %v1233_v52, %v1231_v51 }
 0x237   :  { %1150 = vmatpush1.bf16.msra.mxu0 %v1149_v53 }
 0x238   :  { %1151 = vmatprep.subr.bf16.mxu0 %v1239_v4  ;;  %v1235_v54 = vpop.eup %1234  ;;  %v828_v4 = vld [vmem:[%s1729_s5 + $0x28] sm:$0xff] }
 0x23c   :  { %v1237_v55 = vpop.eup %1236 }
 0x23d   :  { %v1152_v56 = vpack.c.bf16 %v1237_v55, %v1235_v54 }
 0x23f   :  { %1153 = vmatpush1.bf16.msra.mxu0 %v1152_v56 }
 0x242   :  { %954 = vmatmul.mubr.f32.vlgmr.msra.gmra.mrb[20].mxu0 %v823_v57 }
 0x243   :  { %1036 = vmatprep.mubr.msk.f32.mxu0 %vm577_vm2, %v826_v58 }
 0x246   :  { %959 = vmatmul.mubr.f32.gmra.mrb[22].mxu0 %v825_v59 }
 0x247   :  { %1037 = vmatprep.mubr.msk.f32.mxu0 %vm577_vm2, %v828_v4 }
 0x24a   :  { %964 = vmatmul.mubr.f32.gmra.mrb[24].mxu0 %v827_v60 }
 0x24b   :  { %1038 = vmatprep.mubr.msk.f32.mxu0 %vm577_vm2, %v830_v61 }
 0x24e   :  { %969 = vmatmul.mubr.f32.gmra.mrb[26].mxu0 %v829_v62 }
 0x24f   :  { %1039 = vmatprep.mubr.msk.f32.mxu0 %vm577_vm2, %v832_v63 }
 0x252   :  { %974 = vmatmul.mubr.f32.gmra.mrb[28].mxu0 %v831_v0 }
 0x253   :  { %1040 = vmatprep.mubr.msk.f32.mxu0 %vm577_vm2, %v834_v1 }
 0x256   :  { %979 = vmatmul.mubr.f32.gmra.mrb[30].mxu0 %v833_v2 }
 0x315   :  { %v955_v5 = vpop.f32.mrb[20].mxu0 }
 0x316   :  { %v956_v6 = vadd.f32 %v955_v5, %v844_v3  ;;  %v957_v7 = vpop.f32.mrb[21].mxu0 }
 0x318   :  { %984 = vst [vmem:[%s1730_s7] sm:$0xff] %v956_v6 }
 0x319   :  { %v960_v9 = vpop.f32.mrb[22].mxu0 }
 0x31a   :  { %v961_v10 = vadd.f32 %v960_v9, %v849_v8  ;;  %v962_v11 = vpop.f32.mrb[23].mxu0 }
 0x31c   :  { %985 = vst [vmem:[%s1730_s7 + $0x8] sm:$0xff] %v961_v10 }
 0x31d   :  { %v965_v13 = vpop.f32.mrb[24].mxu0 }
 0x31e   :  { %v966_v14 = vadd.f32 %v965_v13, %v854_v12  ;;  %v967_v15 = vpop.f32.mrb[25].mxu0 }
 0x320   :  { %986 = vst [vmem:[%s1730_s7 + $0x10] sm:$0xff] %v966_v14 }
 0x321   :  { %v970_v17 = vpop.f32.mrb[26].mxu0 }
 0x322   :  { %v971_v18 = vadd.f32 %v970_v17, %v859_v16  ;;  %v972_v19 = vpop.f32.mrb[27].mxu0 }
 0x324   :  { %987 = vst [vmem:[%s1730_s7 + $0x18] sm:$0xff] %v971_v18 }
 0x325   :  { %v975_v21 = vpop.f32.mrb[28].mxu0 }
 0x326   :  { %v976_v22 = vadd.f32 %v975_v21, %v864_v20  ;;  %v977_v23 = vpop.f32.mrb[29].mxu0 }
 0x328   :  { %988 = vst [vmem:[%s1730_s7 + $0x20] sm:$0xff] %v976_v22 }
 0x329   :  { %v980_v25 = vpop.f32.mrb[30].mxu0 }
 0x32a   :  { %v981_v26 = vadd.f32 %v980_v25, %v869_v24  ;;  %v982_v27 = vpop.f32.mrb[31].mxu0 }
 0x32c   :  { %989 = vst [vmem:[%s1730_s7 + $0x28] sm:$0x1f] %v981_v26 }

</bundles_post_ra>
